<compile_context>
chip_gen: v7x
topology: tpu7x:2x2x1
jax: 0.10.0
libtpu: 0.0.40
codegen_flags: <defaults>
</compile_context>

<pallas_src>
import functools
import math

import jax
import jax.numpy as jnp
from jax.experimental import pallas as pl
from jax.experimental.pallas import tpu as pltpu


OOB_SENTINEL = -1.0e9   # casts safely to int32 and is always outside the image


def _round_up(x, m):
    return ((x + m - 1) // m) * m


# ----------------------------------------------------------------------------
# Kernel 1: pinhole projection on dense (block_n, block_ts, 128) tiles.
#   m_ref : SMEM [V*9]  flattened per-view M = K @ R
#   b_ref : SMEM [V*3]  flattened per-view b = K @ T
#   pc_ref: VMEM (block_n, 3, block_ts, 128)
#   out_ref: VMEM (block_n, 2V, block_ts, 128): rows 0..V-1 = u, V..2V-1 = v
# ----------------------------------------------------------------------------
def project_kernel(m_ref, b_ref, pc_ref, out_ref, *, num_views, num_points,
                   block_ts):
    t_blk = pl.program_id(1)

    pc = pc_ref[...]                       # (B_N, 3, B_TS, 128) f32
    px = pc[:, 0]                          # (B_N, B_TS, 128) — dense vreg tiles
    py = pc[:, 1]
    pz = pc[:, 2]

    # Flat point index of every element in this tile -> mask out the points
    # added by padding T up to a multiple of 128*block_ts.
    sub = jax.lax.broadcasted_iota(jnp.int32, (block_ts, 128), 0)
    lane = jax.lax.broadcasted_iota(jnp.int32, (block_ts, 128), 1)
    point_idx = (t_blk * block_ts + sub) * 128 + lane
    in_range = (point_idx < num_points)[None, :, :]   # (1, B_TS, 128)

    parts = []
    parts_v = []
    for view in range(num_views):          # static unroll over views
        mo = view * 9
        bo = view * 3
        # VPU broadcast multiply-adds (no MXU for a K=3 contraction).
        x = m_ref[mo + 0] * px + m_ref[mo + 1] * py + m_ref[mo + 2] * pz + b_ref[bo + 0]
        y = m_ref[mo + 3] * px + m_ref[mo + 4] * py + m_ref[mo + 5] * pz + b_ref[bo + 1]
        z = m_ref[mo + 6] * px + m_ref[mo + 7] * py + m_ref[mo + 8] * pz + b_ref[bo + 2]
        # TODO(synk): reference semantics for behind-camera points unknown;
        # standard pinhole behaviour (drop z <= eps) is used here.
        front = z > 1e-6
        valid = in_range & front
        z_safe = jnp.where(front, z, 1.0)
        # Exact divide (the result feeds nearest-pixel rounding downstream).
        parts.append(jnp.where(valid, x / z_safe, OOB_SENTINEL))
        parts_v.append(jnp.where(valid, y / z_safe, OOB_SENTINEL))

    # Single dense store of the whole (B_N, 2V, B_TS, 128) block.
    out_ref[...] = jnp.stack(parts + parts_v, axis=1).astype(out_ref.dtype)


def project_points(pc, R, T, K):
    """pc: [N,3,T], R: [V,3,3], T: [V,3], K: [3,3] -> (u, v) each [N,V,Tpad]."""
    N, C, Tpts = pc.shape
    assert C == 3
    V = R.shape[0]

    # Pre-fold the camera matrices once in the wrapper (tiny XLA ops).
    M = jnp.einsum('ij,vjk->vik', K.astype(jnp.float32), R.astype(jnp.float32))
    b = jnp.einsum('ij,vj->vi', K.astype(jnp.float32), T.astype(jnp.float32))
    m_flat = M.reshape(V * 9)
    b_flat = b.reshape(V * 3)

    # Sublane/lane-dense point layout: [N, 3, Tsub, 128].
    t_sub_raw = -(-Tpts // 128)
    block_ts = min(64, _round_up(t_sub_raw, 8))       # <= ~8K points per tile
    t_sub = _round_up(t_sub_raw, block_ts)
    t_pad = t_sub * 128
    block_n = math.gcd(N, 8)                          # amortize per-step cost

    pcf = pc.astype(jnp.float32)
    if t_pad != Tpts:
        pcf = jnp.pad(pcf, ((0, 0), (0, 0), (0, t_pad - Tpts)))
    pcf = pcf.reshape(N, 3, t_sub, 128)

    rows = 2 * V
    grid = (N // block_n, t_sub // block_ts)

    out = pl.pallas_call(
        functools.partial(project_kernel, num_views=V, num_points=Tpts,
                          block_ts=block_ts),
        out_shape=jax.ShapeDtypeStruct((N, rows, t_sub, 128), jnp.float32),
        grid_spec=pltpu.PrefetchScalarGridSpec(
            num_scalar_prefetch=2,         # m_flat, b_flat land in SMEM
            grid=grid,
            in_specs=[
                pl.BlockSpec((block_n, 3, block_ts, 128),
                             lambda n, t, m, bb: (n, 0, t, 0)),
            ],
            out_specs=pl.BlockSpec((block_n, rows, block_ts, 128),
                                   lambda n, t, m, bb: (n, 0, t, 0)),
        ),
        compiler_params=pltpu.CompilerParams(
            dimension_semantics=("parallel", "parallel")),
    )(m_flat, b_flat, pcf)

    out = out.reshape(N, rows, t_pad)
    return out[:, :V, :], out[:, V:, :]


# ----------------------------------------------------------------------------
# Kernel 2: MSE loss (mean reduction). Each grid step emits an independent
# (8, 128) partial sum of squared diffs; the wrapper sums and divides by L.
# ----------------------------------------------------------------------------
LANE = 128
BLOCK_ROWS_MAX = 8192      # 4 MiB f32 / 2 MiB bf16 per input block


def mse_partial_kernel(recon_ref, target_ref, out_ref, *, rows, block_rows):
    r = recon_ref[...].astype(jnp.float32)            # upcast on load (v5e ok)
    t = target_ref[...].astype(jnp.float32)
    d = r - t
    dsq = d * d
    if rows % block_rows != 0:                        # static: only when ragged
        i = pl.program_id(0)
        row_id = jax.lax.broadcasted_iota(jnp.int32, dsq.shape, 0) + i * block_rows
        dsq = jnp.where(row_id < rows, dsq, 0.0)
    # Pure VPU vreg adds down to one (8, 128) tile; dense 4 KiB store.
    out_ref[...] = dsq.reshape(block_rows // 8, 8, LANE).sum(axis=0)[None]


def mse_loss(recon, target):
    """recon/target: same shape -> scalar float32 mean squared error."""
    if recon.shape != target.shape:
        raise ValueError('Both tensors must have the same shape')

    L = int(recon.size)
    r_flat = recon.reshape(-1)
    t_flat = target.reshape(-1)

    rows = L // LANE
    tail = L - rows * LANE
    total = jnp.float32(0.0)

    if rows > 0:
        block_rows = min(BLOCK_ROWS_MAX, max(16, _round_up(rows, 16)))
        nblk = -(-rows // block_rows)
        if tail == 0:
            r2 = r_flat.reshape(rows, LANE)           # free contiguous reshape
            t2 = t_flat.reshape(rows, LANE)
        else:
            r2 = jax.lax.slice(r_flat, (0,), (rows * LANE,)).reshape(rows, LANE)
            t2 = jax.lax.slice(t_flat, (0,), (rows * LANE,)).reshape(rows, LANE)

        partial = pl.pallas_call(
            functools.partial(mse_partial_kernel, rows=rows,
                              block_rows=block_rows),
            out_shape=jax.ShapeDtypeStruct((nblk, 8, LANE), jnp.float32),
            grid_spec=pltpu.PrefetchScalarGridSpec(
                num_scalar_prefetch=0,
                grid=(nblk,),
                in_specs=[
                    pl.BlockSpec((block_rows, LANE), lambda i: (i, 0)),
                    pl.BlockSpec((block_rows, LANE), lambda i: (i, 0)),
                ],
                out_specs=pl.BlockSpec((1, 8, LANE), lambda i: (i, 0, 0)),
            ),
            compiler_params=pltpu.CompilerParams(
                dimension_semantics=("parallel",),     # megacore-splittable
                vmem_limit_bytes=32 * 1024 * 1024),
        )(r2, t2)
        total = total + jnp.sum(partial)

    if tail > 0:                                       # < 128 ragged elements
        rt = r_flat[rows * LANE:].astype(jnp.float32)
        tt = t_flat[rows * LANE:].astype(jnp.float32)
        total = total + jnp.sum((rt - tt) ** 2)

    return total / jnp.float32(L)


# ----------------------------------------------------------------------------
# JAX glue: rasterize projected points into binary images of target's size.
# ----------------------------------------------------------------------------
def rasterize(u, v, H, W, dtype=jnp.bfloat16):
    """u, v: [N, V, T] float pixel coords -> images [N, V, H, W] with 1.0 hits."""
    N, Vn, _ = u.shape
    ui = jnp.round(u).astype(jnp.int32)    # column (x)
    vi = jnp.round(v).astype(jnp.int32)    # row    (y)
    in_bounds = (ui >= 0) & (ui < W) & (vi >= 0) & (vi < H)
    # Out-of-bounds / sentinel points -> index == extent so mode='drop' drops
    # them (negative indices would otherwise wrap).
    ui = jnp.where(in_bounds, ui, W)
    vi = jnp.where(in_bounds, vi, H)
    n_idx = jnp.arange(N)[:, None, None]
    v_idx = jnp.arange(Vn)[None, :, None]
    img = jnp.zeros((N, Vn, H, W), dtype)  # 0/1 exact in bf16 -> lossless
    img = img.at[n_idx, v_idx, vi, ui].set(1.0, mode='drop')
    return img


# ----------------------------------------------------------------------------
# Full module forward
# ----------------------------------------------------------------------------
def make_extrinsics(num_views):
    """Deterministic stand-ins for R.npy / T.npy: small z-rotations + offsets."""
    angles = jnp.arange(num_views, dtype=jnp.float32) * 0.1
    c, s = jnp.cos(angles), jnp.sin(angles)
    z, o = jnp.zeros_like(c), jnp.ones_like(c)
    R = jnp.stack([jnp.stack([c, -s, z], -1),
                   jnp.stack([s, c, z], -1),
                   jnp.stack([z, z, o], -1)], axis=1)                 # [V, 3, 3]
    T = jnp.stack([0.02 * angles, -0.02 * angles, 4.0 * o], axis=-1)  # [V, 3]
    return R, T


def reconstruction_loss(output_pc, target, R, T, K):
    """output_pc: [N, 3, T], target: [N, V, H, W] -> scalar loss."""
    N, V, H, W = target.shape
    u, v = project_points(output_pc, R[:V], T[:V], K)  # Pallas (VPU projection)
    output_ims = rasterize(u, v, H, W, dtype=jnp.bfloat16)   # XLA glue (scatter)
    output_ims = output_ims.reshape(target.shape)
    return mse_loss(output_ims, target)                # Pallas (tiled reduction)


if __name__ == "__main__":
    N, V, H, W = 2, 3, 16, 64
    Tpts = 256

    key = jax.random.PRNGKey(0)
    k1, k2 = jax.random.split(key)

    # point cloud roughly around the origin; camera translation puts z > 0
    output_pc = 0.5 * jax.random.normal(k1, (N, 3, Tpts), dtype=jnp.float32)
    target = jax.random.uniform(k2, (N, V, H, W), dtype=jnp.float32)

    R, T = make_extrinsics(V)
    # Module's intrinsics target its native 1300x1300 raster; scale focal /
    # principal point to the small demo image so projected points land in it.
    K = jnp.array([[40.0, 0.0, W / 2.0],
                   [0.0, 40.0, H / 2.0],
                   [0.0, 0.0, 1.0]], dtype=jnp.float32)

    loss = jax.block_until_ready(
        jax.jit(reconstruction_loss)(output_pc, target, R, T, K))
    assert loss.shape == () and bool(jnp.isfinite(loss))
    print("KERNEL_OK")
</pallas_src>

<mosaic_0001>
module attributes {stable_mosaic.version = 11 : i64} {
  func.func @project_kernel(%arg0: i32, %arg1: i32, %arg2: memref<27xf32, #tpu.memory_space<smem>>, %arg3: memref<9xf32, #tpu.memory_space<smem>>, %arg4: memref<2x3x8x128xf32, #tpu.memory_space<vmem>>, %arg5: memref<2x6x8x128xf32, #tpu.memory_space<vmem>>) attributes {dimension_semantics = [#tpu.dimension_semantics<parallel>, #tpu.dimension_semantics<parallel>], iteration_bounds = array<i64: 1, 1>, scalar_prefetch = 2 : i64, scratch_operands = 0 : i64, tpu.core_type = #tpu.core_type<tc>, window_params = [{transform_indices = @transform_0, window_bounds = array<i64: 2, 3, 8, 128>}, {transform_indices = @transform_1, window_bounds = array<i64: 2, 6, 8, 128>}]} {
    %c0 = arith.constant 0 : index
    %c0_0 = arith.constant 0 : index
    %c0_1 = arith.constant 0 : index
    %c0_2 = arith.constant 0 : index
    %0 = vector.load %arg4[%c0, %c0_0, %c0_1, %c0_2] : memref<2x3x8x128xf32, #tpu.memory_space<vmem>>, vector<2x3x8x128xf32>
    %1 = vector.extract_strided_slice %0 {offsets = [0, 0, 0, 0], sizes = [2, 1, 8, 128], strides = [1, 1, 1, 1]} : vector<2x3x8x128xf32> to vector<2x1x8x128xf32>
    %2 = vector.shape_cast %1 : vector<2x1x8x128xf32> to vector<2x8x128xf32>
    %3 = vector.extract_strided_slice %0 {offsets = [0, 1, 0, 0], sizes = [2, 1, 8, 128], strides = [1, 1, 1, 1]} : vector<2x3x8x128xf32> to vector<2x1x8x128xf32>
    %4 = vector.shape_cast %3 : vector<2x1x8x128xf32> to vector<2x8x128xf32>
    %5 = vector.extract_strided_slice %0 {offsets = [0, 2, 0, 0], sizes = [2, 1, 8, 128], strides = [1, 1, 1, 1]} : vector<2x3x8x128xf32> to vector<2x1x8x128xf32>
    %6 = vector.shape_cast %5 : vector<2x1x8x128xf32> to vector<2x8x128xf32>
    %7 = tpu.iota {dimensions = array<i32: 0>} : vector<8x128xi32>
    %8 = tpu.iota {dimensions = array<i32: 1>} : vector<8x128xi32>
    %c8_i32 = arith.constant 8 : i32
    %9 = arith.muli %arg1, %c8_i32 : i32
    %10 = vector.broadcast %9 : i32 to vector<8x128xi32>
    %11 = arith.addi %10, %7 : vector<8x128xi32>
    %c128_i32 = arith.constant 128 : i32
    %12 = vector.broadcast %c128_i32 : i32 to vector<8x128xi32>
    %13 = arith.muli %11, %12 : vector<8x128xi32>
    %14 = arith.addi %13, %8 : vector<8x128xi32>
    %c256_i32 = arith.constant 256 : i32
    %15 = vector.broadcast %c256_i32 : i32 to vector<8x128xi32>
    %16 = arith.cmpi slt, %14, %15 : vector<8x128xi32>
    %17 = vector.shape_cast %16 : vector<8x128xi1> to vector<1x8x128xi1>
    %c0_3 = arith.constant 0 : index
    %18 = memref.load %arg2[%c0_3] : memref<27xf32, #tpu.memory_space<smem>>
    %19 = vector.broadcast %18 : f32 to vector<2x8x128xf32>
    %20 = arith.mulf %19, %2 : vector<2x8x128xf32>
    %c1 = arith.constant 1 : index
    %21 = memref.load %arg2[%c1] : memref<27xf32, #tpu.memory_space<smem>>
    %22 = vector.broadcast %21 : f32 to vector<2x8x128xf32>
    %23 = arith.mulf %22, %4 : vector<2x8x128xf32>
    %24 = arith.addf %20, %23 : vector<2x8x128xf32>
    %c2 = arith.constant 2 : index
    %25 = memref.load %arg2[%c2] : memref<27xf32, #tpu.memory_space<smem>>
    %26 = vector.broadcast %25 : f32 to vector<2x8x128xf32>
    %27 = arith.mulf %26, %6 : vector<2x8x128xf32>
    %28 = arith.addf %24, %27 : vector<2x8x128xf32>
    %c0_4 = arith.constant 0 : index
    %29 = memref.load %arg3[%c0_4] : memref<9xf32, #tpu.memory_space<smem>>
    %30 = vector.broadcast %29 : f32 to vector<2x8x128xf32>
    %31 = arith.addf %28, %30 : vector<2x8x128xf32>
    %c3 = arith.constant 3 : index
    %32 = memref.load %arg2[%c3] : memref<27xf32, #tpu.memory_space<smem>>
    %33 = vector.broadcast %32 : f32 to vector<2x8x128xf32>
    %34 = arith.mulf %33, %2 : vector<2x8x128xf32>
    %c4 = arith.constant 4 : index
    %35 = memref.load %arg2[%c4] : memref<27xf32, #tpu.memory_space<smem>>
    %36 = vector.broadcast %35 : f32 to vector<2x8x128xf32>
    %37 = arith.mulf %36, %4 : vector<2x8x128xf32>
    %38 = arith.addf %34, %37 : vector<2x8x128xf32>
    %c5 = arith.constant 5 : index
    %39 = memref.load %arg2[%c5] : memref<27xf32, #tpu.memory_space<smem>>
    %40 = vector.broadcast %39 : f32 to vector<2x8x128xf32>
    %41 = arith.mulf %40, %6 : vector<2x8x128xf32>
    %42 = arith.addf %38, %41 : vector<2x8x128xf32>
    %c1_5 = arith.constant 1 : index
    %43 = memref.load %arg3[%c1_5] : memref<9xf32, #tpu.memory_space<smem>>
    %44 = vector.broadcast %43 : f32 to vector<2x8x128xf32>
    %45 = arith.addf %42, %44 : vector<2x8x128xf32>
    %c6 = arith.constant 6 : index
    %46 = memref.load %arg2[%c6] : memref<27xf32, #tpu.memory_space<smem>>
    %47 = vector.broadcast %46 : f32 to vector<2x8x128xf32>
    %48 = arith.mulf %47, %2 : vector<2x8x128xf32>
    %c7 = arith.constant 7 : index
    %49 = memref.load %arg2[%c7] : memref<27xf32, #tpu.memory_space<smem>>
    %50 = vector.broadcast %49 : f32 to vector<2x8x128xf32>
    %51 = arith.mulf %50, %4 : vector<2x8x128xf32>
    %52 = arith.addf %48, %51 : vector<2x8x128xf32>
    %c8 = arith.constant 8 : index
    %53 = memref.load %arg2[%c8] : memref<27xf32, #tpu.memory_space<smem>>
    %54 = vector.broadcast %53 : f32 to vector<2x8x128xf32>
    %55 = arith.mulf %54, %6 : vector<2x8x128xf32>
    %56 = arith.addf %52, %55 : vector<2x8x128xf32>
    %c2_6 = arith.constant 2 : index
    %57 = memref.load %arg3[%c2_6] : memref<9xf32, #tpu.memory_space<smem>>
    %58 = vector.broadcast %57 : f32 to vector<2x8x128xf32>
    %59 = arith.addf %56, %58 : vector<2x8x128xf32>
    %cst = arith.constant 9.99999997E-7 : f32
    %60 = vector.broadcast %cst : f32 to vector<2x8x128xf32>
    %61 = arith.cmpf ogt, %59, %60 : vector<2x8x128xf32>
    %62 = vector.broadcast %17 : vector<1x8x128xi1> to vector<2x8x128xi1>
    %63 = arith.andi %62, %61 : vector<2x8x128xi1>
    %cst_7 = arith.constant 1.000000e+00 : f32
    %64 = vector.broadcast %cst_7 : f32 to vector<2x8x128xf32>
    %65 = arith.select %61, %59, %64 : vector<2x8x128xi1>, vector<2x8x128xf32>
    %66 = arith.divf %31, %65 : vector<2x8x128xf32>
    %cst_8 = arith.constant -1.000000e+09 : f32
    %67 = vector.broadcast %cst_8 : f32 to vector<2x8x128xf32>
    %68 = arith.select %63, %66, %67 : vector<2x8x128xi1>, vector<2x8x128xf32>
    %69 = arith.divf %45, %65 : vector<2x8x128xf32>
    %cst_9 = arith.constant -1.000000e+09 : f32
    %70 = vector.broadcast %cst_9 : f32 to vector<2x8x128xf32>
    %71 = arith.select %63, %69, %70 : vector<2x8x128xi1>, vector<2x8x128xf32>
    %c9 = arith.constant 9 : index
    %72 = memref.load %arg2[%c9] : memref<27xf32, #tpu.memory_space<smem>>
    %73 = vector.broadcast %72 : f32 to vector<2x8x128xf32>
    %74 = arith.mulf %73, %2 : vector<2x8x128xf32>
    %c10 = arith.constant 10 : index
    %75 = memref.load %arg2[%c10] : memref<27xf32, #tpu.memory_space<smem>>
    %76 = vector.broadcast %75 : f32 to vector<2x8x128xf32>
    %77 = arith.mulf %76, %4 : vector<2x8x128xf32>
    %78 = arith.addf %74, %77 : vector<2x8x128xf32>
    %c11 = arith.constant 11 : index
    %79 = memref.load %arg2[%c11] : memref<27xf32, #tpu.memory_space<smem>>
    %80 = vector.broadcast %79 : f32 to vector<2x8x128xf32>
    %81 = arith.mulf %80, %6 : vector<2x8x128xf32>
    %82 = arith.addf %78, %81 : vector<2x8x128xf32>
    %c3_10 = arith.constant 3 : index
    %83 = memref.load %arg3[%c3_10] : memref<9xf32, #tpu.memory_space<smem>>
    %84 = vector.broadcast %83 : f32 to vector<2x8x128xf32>
    %85 = arith.addf %82, %84 : vector<2x8x128xf32>
    %c12 = arith.constant 12 : index
    %86 = memref.load %arg2[%c12] : memref<27xf32, #tpu.memory_space<smem>>
    %87 = vector.broadcast %86 : f32 to vector<2x8x128xf32>
    %88 = arith.mulf %87, %2 : vector<2x8x128xf32>
    %c13 = arith.constant 13 : index
    %89 = memref.load %arg2[%c13] : memref<27xf32, #tpu.memory_space<smem>>
    %90 = vector.broadcast %89 : f32 to vector<2x8x128xf32>
    %91 = arith.mulf %90, %4 : vector<2x8x128xf32>
    %92 = arith.addf %88, %91 : vector<2x8x128xf32>
    %c14 = arith.constant 14 : index
    %93 = memref.load %arg2[%c14] : memref<27xf32, #tpu.memory_space<smem>>
    %94 = vector.broadcast %93 : f32 to vector<2x8x128xf32>
    %95 = arith.mulf %94, %6 : vector<2x8x128xf32>
    %96 = arith.addf %92, %95 : vector<2x8x128xf32>
    %c4_11 = arith.constant 4 : index
    %97 = memref.load %arg3[%c4_11] : memref<9xf32, #tpu.memory_space<smem>>
    %98 = vector.broadcast %97 : f32 to vector<2x8x128xf32>
    %99 = arith.addf %96, %98 : vector<2x8x128xf32>
    %c15 = arith.constant 15 : index
    %100 = memref.load %arg2[%c15] : memref<27xf32, #tpu.memory_space<smem>>
    %101 = vector.broadcast %100 : f32 to vector<2x8x128xf32>
    %102 = arith.mulf %101, %2 : vector<2x8x128xf32>
    %c16 = arith.constant 16 : index
    %103 = memref.load %arg2[%c16] : memref<27xf32, #tpu.memory_space<smem>>
    %104 = vector.broadcast %103 : f32 to vector<2x8x128xf32>
    %105 = arith.mulf %104, %4 : vector<2x8x128xf32>
    %106 = arith.addf %102, %105 : vector<2x8x128xf32>
    %c17 = arith.constant 17 : index
    %107 = memref.load %arg2[%c17] : memref<27xf32, #tpu.memory_space<smem>>
    %108 = vector.broadcast %107 : f32 to vector<2x8x128xf32>
    %109 = arith.mulf %108, %6 : vector<2x8x128xf32>
    %110 = arith.addf %106, %109 : vector<2x8x128xf32>
    %c5_12 = arith.constant 5 : index
    %111 = memref.load %arg3[%c5_12] : memref<9xf32, #tpu.memory_space<smem>>
    %112 = vector.broadcast %111 : f32 to vector<2x8x128xf32>
    %113 = arith.addf %110, %112 : vector<2x8x128xf32>
    %cst_13 = arith.constant 9.99999997E-7 : f32
    %114 = vector.broadcast %cst_13 : f32 to vector<2x8x128xf32>
    %115 = arith.cmpf ogt, %113, %114 : vector<2x8x128xf32>
    %116 = vector.broadcast %17 : vector<1x8x128xi1> to vector<2x8x128xi1>
    %117 = arith.andi %116, %115 : vector<2x8x128xi1>
    %cst_14 = arith.constant 1.000000e+00 : f32
    %118 = vector.broadcast %cst_14 : f32 to vector<2x8x128xf32>
    %119 = arith.select %115, %113, %118 : vector<2x8x128xi1>, vector<2x8x128xf32>
    %120 = arith.divf %85, %119 : vector<2x8x128xf32>
    %cst_15 = arith.constant -1.000000e+09 : f32
    %121 = vector.broadcast %cst_15 : f32 to vector<2x8x128xf32>
    %122 = arith.select %117, %120, %121 : vector<2x8x128xi1>, vector<2x8x128xf32>
    %123 = arith.divf %99, %119 : vector<2x8x128xf32>
    %cst_16 = arith.constant -1.000000e+09 : f32
    %124 = vector.broadcast %cst_16 : f32 to vector<2x8x128xf32>
    %125 = arith.select %117, %123, %124 : vector<2x8x128xi1>, vector<2x8x128xf32>
    %c18 = arith.constant 18 : index
    %126 = memref.load %arg2[%c18] : memref<27xf32, #tpu.memory_space<smem>>
    %127 = vector.broadcast %126 : f32 to vector<2x8x128xf32>
    %128 = arith.mulf %127, %2 : vector<2x8x128xf32>
    %c19 = arith.constant 19 : index
    %129 = memref.load %arg2[%c19] : memref<27xf32, #tpu.memory_space<smem>>
    %130 = vector.broadcast %129 : f32 to vector<2x8x128xf32>
    %131 = arith.mulf %130, %4 : vector<2x8x128xf32>
    %132 = arith.addf %128, %131 : vector<2x8x128xf32>
    %c20 = arith.constant 20 : index
    %133 = memref.load %arg2[%c20] : memref<27xf32, #tpu.memory_space<smem>>
    %134 = vector.broadcast %133 : f32 to vector<2x8x128xf32>
    %135 = arith.mulf %134, %6 : vector<2x8x128xf32>
    %136 = arith.addf %132, %135 : vector<2x8x128xf32>
    %c6_17 = arith.constant 6 : index
    %137 = memref.load %arg3[%c6_17] : memref<9xf32, #tpu.memory_space<smem>>
    %138 = vector.broadcast %137 : f32 to vector<2x8x128xf32>
    %139 = arith.addf %136, %138 : vector<2x8x128xf32>
    %c21 = arith.constant 21 : index
    %140 = memref.load %arg2[%c21] : memref<27xf32, #tpu.memory_space<smem>>
    %141 = vector.broadcast %140 : f32 to vector<2x8x128xf32>
    %142 = arith.mulf %141, %2 : vector<2x8x128xf32>
    %c22 = arith.constant 22 : index
    %143 = memref.load %arg2[%c22] : memref<27xf32, #tpu.memory_space<smem>>
    %144 = vector.broadcast %143 : f32 to vector<2x8x128xf32>
    %145 = arith.mulf %144, %4 : vector<2x8x128xf32>
    %146 = arith.addf %142, %145 : vector<2x8x128xf32>
    %c23 = arith.constant 23 : index
    %147 = memref.load %arg2[%c23] : memref<27xf32, #tpu.memory_space<smem>>
    %148 = vector.broadcast %147 : f32 to vector<2x8x128xf32>
    %149 = arith.mulf %148, %6 : vector<2x8x128xf32>
    %150 = arith.addf %146, %149 : vector<2x8x128xf32>
    %c7_18 = arith.constant 7 : index
    %151 = memref.load %arg3[%c7_18] : memref<9xf32, #tpu.memory_space<smem>>
    %152 = vector.broadcast %151 : f32 to vector<2x8x128xf32>
    %153 = arith.addf %150, %152 : vector<2x8x128xf32>
    %c24 = arith.constant 24 : index
    %154 = memref.load %arg2[%c24] : memref<27xf32, #tpu.memory_space<smem>>
    %155 = vector.broadcast %154 : f32 to vector<2x8x128xf32>
    %156 = arith.mulf %155, %2 : vector<2x8x128xf32>
    %c25 = arith.constant 25 : index
    %157 = memref.load %arg2[%c25] : memref<27xf32, #tpu.memory_space<smem>>
    %158 = vector.broadcast %157 : f32 to vector<2x8x128xf32>
    %159 = arith.mulf %158, %4 : vector<2x8x128xf32>
    %160 = arith.addf %156, %159 : vector<2x8x128xf32>
    %c26 = arith.constant 26 : index
    %161 = memref.load %arg2[%c26] : memref<27xf32, #tpu.memory_space<smem>>
    %162 = vector.broadcast %161 : f32 to vector<2x8x128xf32>
    %163 = arith.mulf %162, %6 : vector<2x8x128xf32>
    %164 = arith.addf %160, %163 : vector<2x8x128xf32>
    %c8_19 = arith.constant 8 : index
    %165 = memref.load %arg3[%c8_19] : memref<9xf32, #tpu.memory_space<smem>>
    %166 = vector.broadcast %165 : f32 to vector<2x8x128xf32>
    %167 = arith.addf %164, %166 : vector<2x8x128xf32>
    %cst_20 = arith.constant 9.99999997E-7 : f32
    %168 = vector.broadcast %cst_20 : f32 to vector<2x8x128xf32>
    %169 = arith.cmpf ogt, %167, %168 : vector<2x8x128xf32>
    %170 = vector.broadcast %17 : vector<1x8x128xi1> to vector<2x8x128xi1>
    %171 = arith.andi %170, %169 : vector<2x8x128xi1>
    %cst_21 = arith.constant 1.000000e+00 : f32
    %172 = vector.broadcast %cst_21 : f32 to vector<2x8x128xf32>
    %173 = arith.select %169, %167, %172 : vector<2x8x128xi1>, vector<2x8x128xf32>
    %174 = arith.divf %139, %173 : vector<2x8x128xf32>
    %cst_22 = arith.constant -1.000000e+09 : f32
    %175 = vector.broadcast %cst_22 : f32 to vector<2x8x128xf32>
    %176 = arith.select %171, %174, %175 : vector<2x8x128xi1>, vector<2x8x128xf32>
    %177 = arith.divf %153, %173 : vector<2x8x128xf32>
    %cst_23 = arith.constant -1.000000e+09 : f32
    %178 = vector.broadcast %cst_23 : f32 to vector<2x8x128xf32>
    %179 = arith.select %171, %177, %178 : vector<2x8x128xi1>, vector<2x8x128xf32>
    %180 = vector.shape_cast %68 : vector<2x8x128xf32> to vector<2x1x8x128xf32>
    %181 = vector.shape_cast %122 : vector<2x8x128xf32> to vector<2x1x8x128xf32>
    %182 = vector.shape_cast %176 : vector<2x8x128xf32> to vector<2x1x8x128xf32>
    %183 = vector.shape_cast %71 : vector<2x8x128xf32> to vector<2x1x8x128xf32>
    %184 = vector.shape_cast %125 : vector<2x8x128xf32> to vector<2x1x8x128xf32>
    %185 = vector.shape_cast %179 : vector<2x8x128xf32> to vector<2x1x8x128xf32>
    %186 = tpu.concatenate %180, %181, %182, %183, %184, %185 in 1 : vector<2x1x8x128xf32>, vector<2x1x8x128xf32>, vector<2x1x8x128xf32>, vector<2x1x8x128xf32>, vector<2x1x8x128xf32>, vector<2x1x8x128xf32> -> vector<2x6x8x128xf32>
    %c0_24 = arith.constant 0 : index
    %c0_25 = arith.constant 0 : index
    %c0_26 = arith.constant 0 : index
    %c0_27 = arith.constant 0 : index
    %187 = vector.load %arg5[%c0_24, %c0_25, %c0_26, %c0_27] : memref<2x6x8x128xf32, #tpu.memory_space<vmem>>, vector<2x6x8x128xf32>
    tpu.vector_store %arg5[%c0_24, %c0_25, %c0_26, %c0_27], %186 {strides = array<i32>} : memref<2x6x8x128xf32, #tpu.memory_space<vmem>>, vector<2x6x8x128xf32>,
    return
  }
  func.func @transform_0(%arg0: i32, %arg1: i32, %arg2: memref<27xf32, #tpu.memory_space<smem>>, %arg3: memref<9xf32, #tpu.memory_space<smem>>) -> (i32, i32, i32, i32) {
    %c0_i32 = arith.constant 0 : i32
    %c0_i32_0 = arith.constant 0 : i32
    %c0_i32_1 = arith.constant 0 : i32
    return %arg0, %c0_i32, %arg1, %c0_i32_0 : i32, i32, i32, i32
  }
  func.func @transform_1(%arg0: i32, %arg1: i32, %arg2: memref<27xf32, #tpu.memory_space<smem>>, %arg3: memref<9xf32, #tpu.memory_space<smem>>) -> (i32, i32, i32, i32) {
    %c0_i32 = arith.constant 0 : i32
    %c0_i32_0 = arith.constant 0 : i32
    %c0_i32_1 = arith.constant 0 : i32
    return %arg0, %c0_i32, %arg1, %c0_i32_0 : i32, i32, i32, i32
  }
}

module attributes {stable_mosaic.version = 11 : i64} {
  func.func @mse_partial_kernel(%arg0: i32, %arg1: memref<48x128xbf16, #tpu.memory_space<vmem>>, %arg2: memref<48x128xf32, #tpu.memory_space<vmem>>, %arg3: memref<1x8x128xf32, #tpu.memory_space<vmem>>) attributes {dimension_semantics = [#tpu.dimension_semantics<parallel>], iteration_bounds = array<i64: 1>, scalar_prefetch = 0 : i64, scratch_operands = 0 : i64, tpu.core_type = #tpu.core_type<tc>, window_params = [{transform_indices = @transform_0, window_bounds = array<i64: 48, 128>}, {transform_indices = @transform_1, window_bounds = array<i64: 48, 128>}, {transform_indices = @transform_2, window_bounds = array<i64: 1, 8, 128>}]} {
    %c0 = arith.constant 0 : index
    %c0_0 = arith.constant 0 : index
    %0 = vector.load %arg1[%c0, %c0_0] : memref<48x128xbf16, #tpu.memory_space<vmem>>, vector<48x128xbf16>
    %1 = arith.extf %0 : vector<48x128xbf16> to vector<48x128xf32>
    %c0_1 = arith.constant 0 : index
    %c0_2 = arith.constant 0 : index
    %2 = vector.load %arg2[%c0_1, %c0_2] : memref<48x128xf32, #tpu.memory_space<vmem>>, vector<48x128xf32>
    %3 = arith.subf %1, %2 : vector<48x128xf32>
    %4 = arith.mulf %3, %3 : vector<48x128xf32>
    %5 = vector.shape_cast %4 : vector<48x128xf32> to vector<6x8x128xf32>
    %cst = arith.constant dense<0.000000e+00> : vector<8x128xf32>
    %6 = vector.multi_reduction <add>, %5, %cst [0] : vector<6x8x128xf32> to vector<8x128xf32>
    %7 = vector.shape_cast %6 : vector<8x128xf32> to vector<1x8x128xf32>
    %c0_3 = arith.constant 0 : index
    %c0_4 = arith.constant 0 : index
    %c0_5 = arith.constant 0 : index
    %8 = vector.load %arg3[%c0_3, %c0_4, %c0_5] : memref<1x8x128xf32, #tpu.memory_space<vmem>>, vector<1x8x128xf32>
    tpu.vector_store %arg3[%c0_3, %c0_4, %c0_5], %7 {strides = array<i32>} : memref<1x8x128xf32, #tpu.memory_space<vmem>>, vector<1x8x128xf32>,
    return
  }
  func.func @transform_0(%arg0: i32) -> (i32, i32) {
    %c0_i32 = arith.constant 0 : i32
    %c0_i32_0 = arith.constant 0 : i32
    return %arg0, %c0_i32 : i32, i32
  }
  func.func @transform_1(%arg0: i32) -> (i32, i32) {
    %c0_i32 = arith.constant 0 : i32
    %c0_i32_0 = arith.constant 0 : i32
    return %arg0, %c0_i32 : i32, i32
  }
  func.func @transform_2(%arg0: i32) -> (i32, i32, i32) {
    %c0_i32 = arith.constant 0 : i32
    %c0_i32_0 = arith.constant 0 : i32
    %c0_i32_1 = arith.constant 0 : i32
    return %arg0, %c0_i32, %c0_i32_0 : i32, i32, i32
  }
}

</mosaic_0001>

<bundles_post_ra>
// kernel: reconstruction_loss.2
= control target key start
LH: loop header
LB: loop body
LE: loop exit
PB: predicated region body
PF: predicated region fallthrough
CT: control target
= control target key end

     0   :  { %s827_s0 = inlined_call_operand.vmem [shape: f32[27], index: 0, kind: input, shape index: {}]   ;;  %s828_s2 = inlined_call_operand.vmem [shape: f32[2,3,8,128], index: 2, kind: input, shape index: {}]   ;;  %s829_s3 = inlined_call_operand.vmem [shape: f32[2,6,8,128], index: 3, kind: output, shape index: {}]   ;;  %s830_s1 = inlined_call_operand.vmem [shape: f32[9], index: 1, kind: input, shape index: {}]  }
   0x1   :  { %s8_s14 = sshll.u32 %s827_s0, 4  ;;  %s12_s17 = sshll.u32 %s830_s1, 4  ;;  %s9_s14 = int_to_ptr.vmem [resolvable:$true] %s8_s14  ;;  %s13_s17 = int_to_ptr.vmem [resolvable:$true] %s12_s17 }
   0x2   :  { %s330_s18 = scalar_lea.vmem %s9_s14, 16  ;;  %p335_p1 = scmp.lt.s32.totalorder %s9_s14, %s9_s14 }
   0x3   :  { %p331_p0 = scmp.ne.s32.totalorder %s9_s14, %s330_s18  ;;  %p336_p2 = scmp.lt.s32.totalorder %s330_s18, %s330_s18 }
   0x5   :  { %p337_p3 = por %p336_p2, %p335_p1 }
   0x7   :  { %p338_p4 = pnand %p337_p3, %p331_p0 }
   0x9   :  { %341 = shalt.err (!%p338_p4)  }
   0xa   :  { %s356_s19 = smov [#allocation3]   ;;  %s342_s20 = scalar_lea.vmem %s13_s17, 16 }
   0xb   :  { %11 = dma.vmem_to_smem %s9_s14, 16, %s356_s19, [#allocation2] }
   0xc   :  { %p343_p5 = scmp.ne.s32.totalorder %s13_s17, %s342_s20  ;;  %p347_p6 = scmp.lt.s32.totalorder %s13_s17, %s13_s17 }
   0xd   :  { %p348_p7 = scmp.lt.s32.totalorder %s342_s20, %s342_s20 }
   0xf   :  { %p349_p8 = por %p348_p7, %p347_p6 }
  0x11   :  { %p350_p9 = pnand %p349_p8, %p343_p5 }
  0x13   :  { %353 = shalt.err (!%p350_p9)  }
  0x14   :  { %s357_s0 = smov [#allocation4]  }
  0x15   :  { %15 = dma.vmem_to_smem %s13_s17, 16, %s357_s0, [#allocation2] }
  0x16   :  { %354 = dma.done.wait [#allocation2], 32 }
  0x17   :  { %355 = vsyncadd [#allocation2], 4294967264 }
  0x18   :  { %17 = sfence }
  0x19   :  { %v26_v0 = vlaneseq  ;;  %s384_s1 = sld [smem:[#allocation3]]  ;;  %s386_s21 = sld [smem:[#allocation3 + $0x1]]  ;;  %v405_v2 = vld [vmem:[%s828_s2] sm:$0xff]  ;;  %v414_v3 = vld [vmem:[%s828_s2 + $0x8] sm:$0xff]  ;;  %v424_v6 = vld [vmem:[%s828_s2 + $0x10] sm:$0xff] }
  0x1a   :  { %s388_s22 = sld [smem:[#allocation3 + $0x2]]  ;;  %s390_s23 = sld [smem:[#allocation4]]  ;;  %v485_v32 = vld [vmem:[%s828_s2 + $0x18] sm:$0xff] }
  0x1b   :  { %s392_s24 = sld [smem:[#allocation3 + $0x6]]  ;;  %v27_v1 = vshrl.u32 %v26_v0, 7  ;;  %s394_s25 = sld [smem:[#allocation3 + $0x7]]  ;;  %v29_v4 = vand.u32 127, %v26_v0 }
  0x1c   :  { %s396_s26 = sld [smem:[#allocation3 + $0x8]]  ;;  %s398_s27 = sld [smem:[#allocation4 + $0x2]] }
  0x1d   :  { %s400_s28 = sld [smem:[#allocation3 + $0x9]]  ;;  %s407_s4 = sld [smem:[#allocation3 + $0xa]]  ;;  %v33_v7 = vmul.u32 128, %v27_v1 }
  0x1e   :  { %s409_s5 = sld [smem:[#allocation3 + $0xb]]  ;;  %s419_s9 = sld [smem:[#allocation3 + $0xf]] }
  0x1f   :  { %v37_v5 = vstv %s384_s1  ;;  %s417_s8 = sld [smem:[#allocation4 + $0x3]]  ;;  %v41_v9 = vstv %s386_s21  ;;  %s429_s12 = sld [smem:[#allocation3 + $0x10]]  ;;  %v459_v20 = vadd.s32 %v33_v7, %v29_v4 }
  0x20   :  { %841 = sst [smem:[#allocation6_spill]] %s390_s23  ;;  %v38_v8 = vmul.f32 %v37_v5, %v405_v2  ;;  %v47_v10 = vstv %s388_s22  ;;  %s431_s13 = sld [smem:[#allocation3 + $0x11]]  ;;  %v42_v11 = vmul.f32 %v41_v9, %v414_v3  ;;  %v53_v25 = vstv %s390_s23 }
  0x21   :  { %v48_v12 = vmul.f32 %v47_v10, %v424_v6  ;;  %s439_s14 = sld [smem:[#allocation3 + $0x12]]  ;;  %v77_v13 = vstv %s392_s24  ;;  %v81_v14 = vstv %s394_s25  ;;  %s444_s15 = sld [smem:[#allocation3 + $0x13]]  ;;  %v496_v36 = vmul.f32 %v37_v5, %v485_v32 }
  0x22   :  { %v87_v15 = vstv %s396_s26  ;;  %s446_s16 = sld [smem:[#allocation3 + $0x14]]  ;;  %v44_v16 = vadd.f32 %v42_v11, %v38_v8  ;;  %v78_v17 = vmul.f32 %v77_v13, %v405_v2  ;;  %v82_v18 = vmul.f32 %v81_v14, %v414_v3  ;;  %s457_s17 = sld [smem:[#allocation4 + $0x5]] }
  0x23   :  { %v88_v19 = vmul.f32 %v87_v15, %v424_v6  ;;  %v115_v21 = vstv %s400_s28  ;;  %v119_v22 = vstv %s407_s4  ;;  %s464_s18 = sld [smem:[#allocation3 + $0x18]]  ;;  %s466_s19 = sld [smem:[#allocation3 + $0x19]]  ;;  %v93_v27 = vstv %s398_s27 }
  0x24   :  { %v125_v23 = vstv %s409_s5  ;;  %v50_v24 = vadd.f32 %v48_v12, %v44_v16  ;;  %v84_v26 = vadd.f32 %v82_v18, %v78_v17  ;;  %v116_v28 = vmul.f32 %v115_v21, %v405_v2  ;;  %s478_s20 = sld [smem:[#allocation3 + $0x1a]]  ;;  %s480_s0 = sld [smem:[#allocation3 + $0x3]] }
  0x25   :  { %v120_v29 = vmul.f32 %v119_v22, %v414_v3  ;;  %v155_v30 = vstv %s419_s9  ;;  %v159_v31 = vstv %s429_s12  ;;  %v126_v34 = vmul.f32 %v125_v23, %v424_v6  ;;  %s493_s30 = sld [smem:[#allocation4 + $0x8]]  ;;  %s504_s6 = sld [smem:[#allocation3 + $0x4]] }
  0x26   :  { %v90_v33 = vadd.f32 %v88_v19, %v84_v26  ;;  %v156_v35 = vmul.f32 %v155_v30, %v405_v2  ;;  %v131_v37 = vstv %s417_s8  ;;  %v160_v38 = vmul.f32 %v159_v31, %v414_v3  ;;  %s506_s7 = sld [smem:[#allocation3 + $0x5]]  ;;  %s522_s10 = sld [smem:[#allocation4 + $0x1]] }
  0x27   :  { %842 = sst [smem:[#allocation7_spill]] %s439_s14  ;;  %v165_v39 = vstv %s431_s13  ;;  %v191_v40 = vstv %s439_s14  ;;  %v510_v41 = vadd.f32 %v53_v25, %v50_v24  ;;  %v122_v45 = vadd.f32 %v120_v29, %v116_v28  ;;  %s526_s11 = sld [smem:[#allocation3 + $0xc]] }
  0x28   :  { %843 = sst [smem:[#allocation8_spill]] %s444_s15  ;;  %v514_v42 = vadd.f32 %v93_v27, %v90_v33  ;;  %v166_v43 = vmul.f32 %v165_v39, %v424_v6  ;;  %v192_v44 = vmul.f32 %v191_v40, %v405_v2  ;;  %v162_v46 = vadd.f32 %v160_v38, %v156_v35  ;;  %s528_s1 = sld [smem:[#allocation3 + $0xd]] }
  0x29   :  { %844 = sst [smem:[#allocation9_spill]] %s446_s16  ;;  %v195_v47 = vstv %s444_s15  ;;  %v201_v48 = vstv %s446_s16  ;;  %v171_v49 = vstv %s457_s17  ;;  %s538_s29 = sld [smem:[#allocation3 + $0xe]]  ;;  %vm35_vm1 = vcmp.lt.s32.totalorder %v459_v20, 256 }
  0x2a   :  { %845 = sst [smem:[#allocation10_spill]] %s457_s17  ;;  %vm96_vm0 = vcmp.gt.f32.partialorder %v514_v42, 1e-06  ;;  %v196_v50 = vmul.f32 %v195_v47, %v414_v3  ;;  %v202_v51 = vmul.f32 %v201_v48, %v424_v6  ;;  %v168_v53 = vadd.f32 %v166_v43, %v162_v46  ;;  %s548_s16 = sld [smem:[#allocation3 + $0x15]] }
  0x2b   :  { %846 = sst [smem:[#allocation11_spill]] %s493_s30  ;;  %s540_s23 = sld [smem:[#allocation4 + $0x4]]  ;;  %v102_v52 = vsel %vm96_vm0, %v514_v42, 1.0  ;;  %v231_v54 = vstv %s464_s18  ;;  %v235_v55 = vstv %s466_s19  ;;  %v128_v59 = vadd.f32 %v126_v34, %v122_v45  ;;  %vm624_vm4 = vmand %vm35_vm1, %vm96_vm0  ;;  %v636_v42 = vld [vmem:[%s828_s2 + $0x20] sm:$0xff] }
  0x2c   :  { %847 = sst [smem:[#allocation12_spill]] %s504_s6  ;;  %318 = vrcp.f32 %v102_v52  ;;  %v198_v56 = vadd.f32 %v196_v50, %v192_v44  ;;  %v232_v57 = vmul.f32 %v231_v54, %v405_v2  ;;  %v236_v58 = vmul.f32 %v235_v55, %v414_v3  ;;  %s564_s14 = sld [smem:[#allocation3 + $0x17]] }
  0x2d   :  { %s550_s15 = sld [smem:[#allocation3 + $0x16]]  ;;  %v560_v60 = vadd.f32 %v171_v49, %v168_v53  ;;  %v241_v61 = vstv %s478_s20  ;;  %v57_v62 = vstv %s480_s0  ;;  %v247_v1 = vstv %s493_s30 }
  0x2e   :  { %v238_v63 = vadd.f32 %v236_v58, %v232_v57  ;;  %v242_v0 = vmul.f32 %v241_v61, %v424_v6  ;;  %v58_v4 = vmul.f32 %v57_v62, %v405_v2  ;;  %v204_v5 = vadd.f32 %v202_v51, %v198_v56  ;;  %s574_s17 = sld [smem:[#allocation4 + $0x6]] }
  0x2f   :  { %848 = sst [smem:[#allocation13_spill]] %s538_s29  ;;  %vm174_vm2 = vcmp.gt.f32.partialorder %v560_v60, 1e-06  ;;  %v61_v7 = vstv %s504_s6  ;;  %v67_v8 = vstv %s506_s7  ;;  %v73_v17 = vstv %s522_s10 }
  0x30   :  { %849 = sst [smem:[#allocation14_spill]] %s548_s16  ;;  %v178_v11 = vsel %vm174_vm2, %v560_v60, 1.0  ;;  %v244_v12 = vadd.f32 %v242_v0, %v238_v63  ;;  %v62_v16 = vmul.f32 %v61_v7, %v414_v3  ;;  %v68_v18 = vmul.f32 %v67_v8, %v424_v6  ;;  %s600_s6 = sld [smem:[#allocation4 + $0x7]]  ;;  %v641_v63 = vld [vmem:[%s828_s2 + $0x28] sm:$0xff]  ;;  %vm675_vm5 = vmand %vm35_vm1, %vm174_vm2 }
  0x31   :  { %320 = vrcp.f32 %v178_v11  ;;  %v135_v19 = vstv %s526_s11  ;;  %v139_v24 = vstv %s528_s1  ;;  %v145_v34 = vstv %s538_s29 }
  0x32   :  { %v592_v26 = vadd.f32 %v247_v1, %v244_v12  ;;  %v64_v28 = vadd.f32 %v62_v16, %v58_v4  ;;  %v136_v29 = vmul.f32 %v135_v19, %v405_v2  ;;  %v140_v33 = vmul.f32 %v139_v24, %v414_v3 }
  0x33   :  { %850 = sst [smem:[#allocation15_spill]] %s550_s15  ;;  %v151_v35 = vstv %s540_s23  ;;  %v211_v38 = vstv %s548_s16  ;;  %v215_v43 = vstv %s550_s15  ;;  %v146_v46 = vmul.f32 %v145_v34, %v424_v6 }
  0x34   :  { %vm250_vm3 = vcmp.gt.f32.partialorder %v592_v26, 1e-06  ;;  %v70_v44 = vadd.f32 %v68_v18, %v64_v28  ;;  %v142_v45 = vadd.f32 %v140_v33, %v136_v29  ;;  %v212_v51 = vmul.f32 %v211_v38, %v405_v2 }
  0x35   :  { %v254_v50 = vsel %vm250_vm3, %v592_v26, 1.0  ;;  %v216_v52 = vmul.f32 %v215_v43, %v414_v3  ;;  %v221_v53 = vstv %s564_s14  ;;  %v207_v4 = vstv %s574_s17  ;;  %vm722_vm6 = vmand %vm35_vm1, %vm250_vm3 }
  0x36   :  { %v319_v56 = vpop.eup %318  ;;  %322 = vrcp.f32 %v254_v50  ;;  %v74_v58 = vadd.f32 %v73_v17, %v70_v44  ;;  %v148_v2 = vadd.f32 %v146_v46, %v142_v45  ;;  %v222_v3 = vmul.f32 %v221_v53, %v424_v6 }
  0x37   :  { %v105_v0 = vmul.f32 %v319_v56, %v510_v41  ;;  %v218_v11 = vadd.f32 %v216_v52, %v212_v51  ;;  %v43_v12 = vmul.f32 %v41_v9, %v636_v42  ;;  %v132_v6 = vadd.f32 %v131_v37, %v128_v59 }
  0x38   :  { %v110_v16 = vmul.f32 %v319_v56, %v74_v58  ;;  %v152_v18 = vadd.f32 %v151_v35, %v148_v2  ;;  %v79_v28 = vmul.f32 %v77_v13, %v485_v32  ;;  %v83_v41 = vmul.f32 %v81_v14, %v636_v42 }
  0x39   :  { %v108_v29 = vsel %vm624_vm4, %v105_v0, -1e+09  ;;  %v224_v33 = vadd.f32 %v222_v3, %v218_v11  ;;  %v89_v9 = vmul.f32 %v87_v15, %v641_v63  ;;  %v208_v59 = vadd.f32 %v207_v4, %v204_v5 }
  0x3a   :  { %266 = vst [vmem:[%s829_s3] sm:$0xff] %v108_v29  ;;  %v112_v13 = vsel %vm624_vm4, %v110_v16, -1e+09  ;;  %v227_v44 = vstv %s600_s6  ;;  %v45_v15 = vadd.f32 %v43_v12, %v496_v36  ;;  %v49_v5 = vmul.f32 %v47_v10, %v641_v63 }
  0x3b   :  { %v321_v45 = vpop.eup %320  ;;  %269 = vst [vmem:[%s829_s3 + $0x18] sm:$0xff] %v112_v13  ;;  %v85_v46 = vadd.f32 %v83_v41, %v79_v28  ;;  %v157_v60 = vmul.f32 %v155_v30, %v485_v32  ;;  %v117_v52 = vmul.f32 %v115_v21, %v485_v32  ;;  %v121_v56 = vmul.f32 %v119_v22, %v636_v42 }
  0x3c   :  { %v181_v50 = vmul.f32 %v321_v45, %v132_v6  ;;  %v186_v51 = vmul.f32 %v321_v45, %v152_v18  ;;  %v228_v36 = vadd.f32 %v227_v44, %v224_v33  ;;  %v161_v10 = vmul.f32 %v159_v31, %v636_v42 }
  0x3d   :  { %v91_v57 = vadd.f32 %v89_v9, %v85_v46  ;;  %v167_v30 = vmul.f32 %v165_v39, %v641_v63  ;;  %v51_v22 = vadd.f32 %v49_v5, %v45_v15  ;;  %v233_v2 = vmul.f32 %v231_v54, %v485_v32 }
  0x3e   :  { %v184_v58 = vsel %vm675_vm5, %v181_v50, -1e+09  ;;  %v188_v21 = vsel %vm675_vm5, %v186_v51, -1e+09  ;;  %v163_v39 = vadd.f32 %v161_v10, %v157_v60  ;;  %v123_v11 = vadd.f32 %v121_v56, %v117_v52 }
  0x3f   :  { %267 = vst [vmem:[%s829_s3 + $0x8] sm:$0xff] %v184_v58  ;;  %270 = vst [vmem:[%s829_s3 + $0x20] sm:$0xff] %v188_v21  ;;  %v95_v31 = vadd.f32 %v93_v27, %v91_v57  ;;  %v127_v12 = vmul.f32 %v125_v23, %v641_v63  ;;  %v237_v27 = vmul.f32 %v235_v55, %v636_v42 }
  0x40   :  { %v323_v3 = vpop.eup %322  ;;  %v243_v54 = vmul.f32 %v241_v61, %v641_v63  ;;  %v169_v16 = vadd.f32 %v167_v30, %v163_v39  ;;  %v193_v23 = vmul.f32 %v191_v40, %v485_v32  ;;  %v59_v55 = vmul.f32 %v57_v62, %v485_v32 }
  0x41   :  { %v257_v6 = vmul.f32 %v323_v3, %v208_v59  ;;  %v262_v26 = vmul.f32 %v323_v3, %v228_v36  ;;  %vm97_vm7 = vcmp.gt.f32.partialorder %v95_v31, 1e-06  ;;  %v239_v28 = vadd.f32 %v237_v27, %v233_v2 }
  0x42   :  { %v103_v18 = vsel %vm97_vm7, %v95_v31, 1.0  ;;  %v173_v33 = vadd.f32 %v171_v49, %v169_v16  ;;  %v197_v40 = vmul.f32 %v195_v47, %v636_v42  ;;  %v63_v41 = vmul.f32 %v61_v7, %v636_v42  ;;  %vm101_vm10 = vmand %vm35_vm1, %vm97_vm7 }
  0x43   :  { %v260_v61 = vsel %vm722_vm6, %v257_v6, -1e+09  ;;  %v264_v29 = vsel %vm722_vm6, %v262_v26, -1e+09  ;;  %324 = vrcp.f32 %v103_v18  ;;  %v245_v62 = vadd.f32 %v243_v54, %v239_v28 }
  0x44   :  { %268 = vst [vmem:[%s829_s3 + $0x10] sm:$0xff] %v260_v61  ;;  %271 = vst [vmem:[%s829_s3 + $0x28] sm:$0xff] %v264_v29  ;;  %v69_v49 = vmul.f32 %v67_v8, %v641_v63  ;;  %vm175_vm8 = vcmp.gt.f32.partialorder %v173_v33, 1e-06  ;;  %v137_v9 = vmul.f32 %v135_v19, %v485_v32  ;;  %v141_v59 = vmul.f32 %v139_v24, %v636_v42 }
  0x45   :  { %v147_v13 = vmul.f32 %v145_v34, %v641_v63  ;;  %v179_v47 = vsel %vm175_vm8, %v173_v33, 1.0  ;;  %v249_v45 = vadd.f32 %v247_v1, %v245_v62  ;;  %v65_v7 = vadd.f32 %v63_v41, %v59_v55  ;;  %vm177_vm11 = vmand %vm35_vm1, %vm175_vm8 }
  0x46   :  { %v213_v8 = vmul.f32 %v211_v38, %v485_v32  ;;  %326 = vrcp.f32 %v179_v47  ;;  %v143_v14 = vadd.f32 %v141_v59, %v137_v9  ;;  %v217_v19 = vmul.f32 %v215_v43, %v636_v42 }
  0x47   :  { %v55_v24 = vadd.f32 %v53_v25, %v51_v22  ;;  %v203_v15 = vmul.f32 %v201_v48, %v641_v63  ;;  %vm251_vm9 = vcmp.gt.f32.partialorder %v249_v45, 1e-06  ;;  %v71_v34 = vadd.f32 %v69_v49, %v65_v7 }
  0x48   :  { %v199_v1 = vadd.f32 %v197_v40, %v193_v23  ;;  %v255_v5 = vsel %vm251_vm9, %v249_v45, 1.0  ;;  %v219_v46 = vadd.f32 %v217_v19, %v213_v8  ;;  %v223_v32 = vmul.f32 %v221_v53, %v641_v63  ;;  %vm253_vm12 = vmand %vm35_vm1, %vm251_vm9 }
  0x49   :  { %v129_v38 = vadd.f32 %v127_v12, %v123_v11  ;;  %328 = vrcp.f32 %v255_v5  ;;  %v75_v43 = vadd.f32 %v73_v17, %v71_v34  ;;  %v149_v25 = vadd.f32 %v147_v13, %v143_v14 }
  0x4a   :  { %v205_v48 = vadd.f32 %v203_v15, %v199_v1  ;;  %v225_v60 = vadd.f32 %v223_v32, %v219_v46 }
  0x4b   :  { %v133_v51 = vadd.f32 %v131_v37, %v129_v38  ;;  %v153_v53 = vadd.f32 %v151_v35, %v149_v25 }
  0x4c   :  { %v209_v17 = vadd.f32 %v207_v4, %v205_v48  ;;  %v229_v37 = vadd.f32 %v227_v44, %v225_v60 }
  0x4d   :  { %v325_v42 = vpop.eup %324 }
  0x4e   :  { %v107_v50 = vmul.f32 %v325_v42, %v55_v24  ;;  %v111_v52 = vmul.f32 %v325_v42, %v75_v43 }
  0x50   :  { %v109_v63 = vsel %vm101_vm10, %v107_v50, -1e+09  ;;  %v113_v56 = vsel %vm101_vm10, %v111_v52, -1e+09  ;;  %v327_v36 = vpop.eup %326 }
  0x51   :  { %272 = vst [vmem:[%s829_s3 + $0x30] sm:$0xff] %v109_v63  ;;  %275 = vst [vmem:[%s829_s3 + $0x48] sm:$0xff] %v113_v56  ;;  %v183_v35 = vmul.f32 %v327_v36, %v133_v51  ;;  %v187_v57 = vmul.f32 %v327_v36, %v153_v53 }
  0x53   :  { %v329_v10 = vpop.eup %328  ;;  %v185_v30 = vsel %vm177_vm11, %v183_v35, -1e+09  ;;  %v189_v58 = vsel %vm177_vm11, %v187_v57, -1e+09 }
  0x54   :  { %273 = vst [vmem:[%s829_s3 + $0x38] sm:$0xff] %v185_v30  ;;  %v259_v4 = vmul.f32 %v329_v10, %v209_v17  ;;  %276 = vst [vmem:[%s829_s3 + $0x50] sm:$0xff] %v189_v58  ;;  %v263_v21 = vmul.f32 %v329_v10, %v229_v37 }
  0x56   :  { %v261_v44 = vsel %vm253_vm12, %v259_v4, -1e+09  ;;  %v265_v22 = vsel %vm253_vm12, %v263_v21, -1e+09 }
  0x57   :  { %274 = vst [vmem:[%s829_s3 + $0x40] sm:$0xff] %v261_v44  ;;  %277 = vst [vmem:[%s829_s3 + $0x58] sm:$0xff] %v265_v22 }

// kernel: reconstruction_loss.3
= control target key start
LH: loop header
LB: loop body
LE: loop exit
PB: predicated region body
PF: predicated region fallthrough
CT: control target
= control target key end

     0   :  { %s110_s0 = inlined_call_operand.vmem [shape: bf16[48,128], index: 0, kind: input, shape index: {}]   ;;  %s111_s1 = inlined_call_operand.vmem [shape: f32[48,128], index: 1, kind: input, shape index: {}]   ;;  %s112_s2 = inlined_call_operand.vmem [shape: f32[1,8,128], index: 2, kind: output, shape index: {}]  }
   0x1   :  { %v52_v0 = vld [vmem:[%s110_s0] sm:$0xff]   ;;  %v63_v1 = vld [vmem:[%s110_s0 + $0x8] sm:$0xff]   ;;  %v64_v2 = vld [vmem:[%s110_s0 + $0x10] sm:$0xff]  }
   0x2   :  { %v53_v3 = vunpack.c.l.bf16 %v52_v0  ;;  %v54_v4 = vunpack.c.h.bf16 %v52_v0  ;;  %v57_v5 = vunpack.c.l.bf16 %v63_v1  ;;  %v58_v6 = vunpack.c.h.bf16 %v63_v1  ;;  %v23_v7 = vld [vmem:[%s111_s1] sm:$0xff]  ;;  %v24_v8 = vld [vmem:[%s111_s1 + $0x8] sm:$0xff]  ;;  %v25_v9 = vld [vmem:[%s111_s1 + $0x10] sm:$0xff] }
   0x3   :  { %v61_v10 = vunpack.c.l.bf16 %v64_v2  ;;  %v62_v11 = vunpack.c.h.bf16 %v64_v2  ;;  %v26_v12 = vld [vmem:[%s111_s1 + $0x18] sm:$0xff]  ;;  %v27_v13 = vld [vmem:[%s111_s1 + $0x20] sm:$0xff]  ;;  %v28_v18 = vld [vmem:[%s111_s1 + $0x28] sm:$0xff] }
   0x4   :  { %v29_v14 = vsub.f32 %v53_v3, %v23_v7  ;;  %v30_v15 = vsub.f32 %v54_v4, %v24_v8  ;;  %v31_v16 = vsub.f32 %v57_v5, %v25_v9  ;;  %v32_v17 = vsub.f32 %v58_v6, %v26_v12 }
   0x5   :  { %v33_v19 = vsub.f32 %v61_v10, %v27_v13  ;;  %v34_v23 = vsub.f32 %v62_v11, %v28_v18 }
   0x6   :  { %v35_v20 = vmul.f32 %v29_v14, %v29_v14  ;;  %v36_v21 = vmul.f32 %v30_v15, %v30_v15  ;;  %v37_v22 = vmul.f32 %v31_v16, %v31_v16  ;;  %v38_v24 = vmul.f32 %v32_v17, %v32_v17 }
   0x7   :  { %v39_v26 = vmul.f32 %v33_v19, %v33_v19  ;;  %v40_v28 = vmul.f32 %v34_v23, %v34_v23 }
   0x8   :  { %v41_v25 = vadd.f32 %v36_v21, %v35_v20 }
   0xa   :  { %v42_v27 = vadd.f32 %v41_v25, %v37_v22 }
   0xc   :  { %v43_v29 = vadd.f32 %v42_v27, %v38_v24 }
   0xe   :  { %v44_v30 = vadd.f32 %v43_v29, %v39_v26 }
  0x10   :  { %v45_v31 = vadd.f32 %v44_v30, %v40_v28 }
  0x12   :  { %46 = vst [vmem:[%s112_s2] sm:$0xff] %v45_v31 }

</bundles_post_ra>
